<compile_context>
chip_gen: v6e
topology: v6e:2x2x1
jax: 0.10.0
libtpu: 0.0.40
codegen_flags: <defaults>
</compile_context>

<pallas_src>
import functools

import jax
import jax.numpy as jnp
from jax.experimental import pallas as pl
from jax.experimental.pallas import tpu as pltpu

_LANE = 128
_TARGET_TILE_BYTES = 2 << 20  # ~2 MiB per array per tile (fits all generations)


# ----------------------------------------------------------------------------
# Pallas kernel: fused axpby  (out = alpha * x + beta * y), elementwise on VPU.
# alpha/beta are bound at Lambda construction time, so they are compile-time
# Python constants closed over by the kernel body; trivial values are folded
# at trace time (saves a vmul / broadcast constant per vreg).
# ----------------------------------------------------------------------------
def _axpby_kernel(x_ref, y_ref, o_ref, *, alpha, beta):
    x = x_ref[...]
    y = y_ref[...]
    if beta == 0.0:
        res = x if alpha == 1.0 else alpha * x
    elif alpha == 0.0:
        res = y if beta == 1.0 else beta * y
    else:
        xa = x if alpha == 1.0 else alpha * x
        yb = y if beta == 1.0 else beta * y
        res = xa + yb
    o_ref[...] = res.astype(o_ref.dtype)


def _choose_layout(n, dtype):
    """Pick (padded_n, rows, cols, block_rows) for a lane-dense 2D slab."""
    itemsize = jnp.dtype(dtype).itemsize
    # Sublane packing: 8 rows/vreg for 32-bit, 16 for bf16/fp16, 32 for int8.
    sub = max(8, 32 // itemsize)
    unit = sub * _LANE
    n_pad = ((n + unit - 1) // unit) * unit
    n_vregs = n_pad // unit

    # Widest lane-dense slab: up to 16 vregs (2048 lanes) wide.
    c = min(n_vregs, 16)
    while n_vregs % c:
        c -= 1
    cols = c * _LANE
    rows = n_pad // cols  # guaranteed multiple of `sub`

    # Largest multiple-of-`sub` divisor of `rows` whose tile stays under the
    # per-array target (~2 MiB): 3 arrays x 2 buffers x 2 MiB = 12 MiB, under
    # the scoped-VMEM default on every generation (16/32/32 MiB).
    max_br = max(sub, (_TARGET_TILE_BYTES // (cols * itemsize)) // sub * sub)
    block_rows = sub
    for br in range(min(rows, max_br), sub - 1, -sub):
        if rows % br == 0:
            block_rows = br
            break
    return n_pad, rows, cols, block_rows


def _axpby_pallas_2d(x2d, y2d, alpha, beta, block_rows):
    """x2d, y2d: (R, C) with R % block_rows == 0 and C % 128 == 0."""
    R, C = x2d.shape
    assert R % block_rows == 0 and C % _LANE == 0, (R, C, block_rows)
    grid = (R // block_rows,)
    tile_bytes = block_rows * C * x2d.dtype.itemsize
    kernel = functools.partial(_axpby_kernel, alpha=alpha, beta=beta)
    return pl.pallas_call(
        kernel,
        out_shape=jax.ShapeDtypeStruct((R, C), x2d.dtype),
        grid_spec=pltpu.PrefetchScalarGridSpec(
            num_scalar_prefetch=0,
            grid=grid,
            in_specs=[
                pl.BlockSpec((block_rows, C), lambda i: (i, 0)),
                pl.BlockSpec((block_rows, C), lambda i: (i, 0)),
            ],
            out_specs=pl.BlockSpec((block_rows, C), lambda i: (i, 0)),
        ),
        compiler_params=pltpu.CompilerParams(
            # "parallel" lets v7x shard the row axis across its 2 TensorCores;
            # neutral on v5e/v6e.
            dimension_semantics=("parallel",),
            # Explicit headroom; tiles are capped so this stays within the
            # smallest scoped default (v5e 16 MiB) anyway.
            vmem_limit_bytes=min(32 << 20, max(16 << 20, 8 * tile_bytes)),
        ),
        # TODO(synk): could alias x -> out (input_output_aliases={0: 0}) to cut
        # HBM traffic when in-place semantics are acceptable for the wrapped fn.
    )(x2d, y2d)


def scale_and_add(x, y, alpha=1.0, beta=1.0):
    """The function wrapped by Lambda. Glue (reshape/pad) in JAX, math in Pallas."""
    assert x.shape == y.shape and x.dtype == y.dtype
    orig_shape = x.shape
    n = x.size
    n_pad, rows, cols, block_rows = _choose_layout(n, x.dtype)
    xf = x.reshape(-1)
    yf = y.reshape(-1)
    if n_pad != n:
        xf = jnp.pad(xf, (0, n_pad - n))
        yf = jnp.pad(yf, (0, n_pad - n))
    out2d = _axpby_pallas_2d(
        xf.reshape(rows, cols), yf.reshape(rows, cols),
        float(alpha), float(beta), block_rows,
    )
    outf = out2d.reshape(-1)
    if n_pad != n:
        outf = outf[:n]
    return outf.reshape(orig_shape)


# ----------------------------------------------------------------------------
# JAX equivalent of the PyTorch `Lambda` module: wraps a callable, pre-binding
# any positional / keyword constructor arguments with functools.partial.
# ----------------------------------------------------------------------------
class Lambda:
    def __init__(self, f, *args, **kwargs):
        if args or kwargs:
            self.f = functools.partial(f, *args, **kwargs)
        else:
            self.f = f

    def __call__(self, *args, **kwargs):
        return self.f(*args, **kwargs)

    def extra_repr(self):
        if not isinstance(self.f, functools.partial):
            return f"f={self.f.__module__}.{self.f.__name__}"
        parts = [f"{self.f.func.__module__}.{self.f.func.__name__}"]
        parts.extend(repr(a) for a in self.f.args)
        parts.extend(f"{k}={v!r}" for k, v in self.f.keywords.items())
        return "f=functools.partial(" + ", ".join(parts) + ")"


if __name__ == "__main__":
    # Module has no parameters; only deterministic example inputs are needed.
    key = jax.random.PRNGKey(0)
    kx, ky = jax.random.split(key)
    # NCHW, small shapes: batch=2, channels=4, spatial=16x16
    x = jax.random.normal(kx, (2, 4, 16, 16), dtype=jnp.float32)
    y = jax.random.normal(ky, (2, 4, 16, 16), dtype=jnp.float32)

    # Lambda with pre-bound keyword args (functools.partial semantics).
    module = Lambda(scale_and_add, alpha=2.0, beta=0.5)

    out = module(x, y)
    out = jax.block_until_ready(out)

    ref = 2.0 * x + 0.5 * y
    assert out.shape == x.shape and out.dtype == x.dtype
    assert jnp.allclose(out, ref, atol=1e-6, rtol=1e-6)

    print("KERNEL_OK")
</pallas_src>

<mosaic_0001>
module attributes {stable_mosaic.version = 11 : i64} {
  func.func @_axpby_kernel(%arg0: i32, %arg1: memref<8x256xf32, #tpu.memory_space<vmem>>, %arg2: memref<8x256xf32, #tpu.memory_space<vmem>>, %arg3: memref<8x256xf32, #tpu.memory_space<vmem>>) attributes {dimension_semantics = [#tpu.dimension_semantics<parallel>], iteration_bounds = array<i64: 1>, scalar_prefetch = 0 : i64, scratch_operands = 0 : i64, tpu.core_type = #tpu.core_type<tc>, window_params = [{transform_indices = @transform_0, window_bounds = array<i64: 8, 256>}, {transform_indices = @transform_1, window_bounds = array<i64: 8, 256>}, {transform_indices = @transform_2, window_bounds = array<i64: 8, 256>}]} {
    %c0 = arith.constant 0 : index
    %c0_0 = arith.constant 0 : index
    %0 = vector.load %arg1[%c0, %c0_0] : memref<8x256xf32, #tpu.memory_space<vmem>>, vector<8x256xf32>
    %c0_1 = arith.constant 0 : index
    %c0_2 = arith.constant 0 : index
    %1 = vector.load %arg2[%c0_1, %c0_2] : memref<8x256xf32, #tpu.memory_space<vmem>>, vector<8x256xf32>
    %cst = arith.constant 2.000000e+00 : f32
    %2 = vector.broadcast %cst : f32 to vector<8x256xf32>
    %3 = arith.mulf %2, %0 : vector<8x256xf32>
    %cst_3 = arith.constant 5.000000e-01 : f32
    %4 = vector.broadcast %cst_3 : f32 to vector<8x256xf32>
    %5 = arith.mulf %4, %1 : vector<8x256xf32>
    %6 = arith.addf %3, %5 : vector<8x256xf32>
    %c0_4 = arith.constant 0 : index
    %c0_5 = arith.constant 0 : index
    %7 = vector.load %arg3[%c0_4, %c0_5] : memref<8x256xf32, #tpu.memory_space<vmem>>, vector<8x256xf32>
    tpu.vector_store %arg3[%c0_4, %c0_5], %6 {strides = array<i32>} : memref<8x256xf32, #tpu.memory_space<vmem>>, vector<8x256xf32>,
    return
  }
  func.func @transform_0(%arg0: i32) -> (i32, i32) {
    %c0_i32 = arith.constant 0 : i32
    %c0_i32_0 = arith.constant 0 : i32
    return %arg0, %c0_i32 : i32, i32
  }
  func.func @transform_1(%arg0: i32) -> (i32, i32) {
    %c0_i32 = arith.constant 0 : i32
    %c0_i32_0 = arith.constant 0 : i32
    return %arg0, %c0_i32 : i32, i32
  }
  func.func @transform_2(%arg0: i32) -> (i32, i32) {
    %c0_i32 = arith.constant 0 : i32
    %c0_i32_0 = arith.constant 0 : i32
    return %arg0, %c0_i32 : i32, i32
  }
}

</mosaic_0001>

<bundles_post_ra>
// kernel: tpu_custom_call.1
= control target key start
LH: loop header
LB: loop body
LE: loop exit
PB: predicated region body
PF: predicated region fallthrough
CT: control target
= control target key end

     0   :  { %7 = vsyncpa [#allocation3], 0  ;;  %s160_s0 = inlined_call_operand.hbm [shape: f32[8,256], index: 0, kind: input, shape index: {}]   ;;  %s161_s1 = inlined_call_operand.hbm [shape: f32[8,256], index: 1, kind: input, shape index: {}]   ;;  %s162_s2 = inlined_call_operand.hbm [shape: f32[8,256], index: 2, kind: output, shape index: {}]  }
   0x1   :  { %8 = vsyncpa [#allocation6], 0 }
   0x2   :  { %9 = vsyncpa [#allocation4], 0  ;;  %s133_s9 = smov [#allocation2]   ;;  %s134_s11 = smov [#allocation5]  }
   0x3   :  { %s16_s10 = sshll.u32 %s133_s9, 4  ;;  %s26_s12 = sshll.u32 %s134_s11, 4  ;;  %s17_s10 = int_to_ptr.vmem [resolvable:$true] %s16_s10  ;;  %s27_s12 = int_to_ptr.vmem [resolvable:$true] %s26_s12 }
   0x4   :  { %s75_s13 = scalar_lea.vmem %s17_s10, 256  ;;  %p80_p1 = scmp.lt.s32.totalorder %s17_s10, %s17_s10 }
   0x5   :  { %p76_p0 = scmp.ne.s32.totalorder %s17_s10, %s75_s13  ;;  %p81_p2 = scmp.lt.s32.totalorder %s75_s13, %s75_s13 }
   0x7   :  { %p82_p3 = por %p81_p2, %p80_p1 }
   0x9   :  { %p83_p4 = pnand %p82_p3, %p76_p0 }
   0xb   :  { %86 = shalt.err (!%p83_p4)
}
   0xc   :  { %19 = dma.hbm_to_vmem [thread:$0]  %s160_s0, 256, %s17_s10, [#allocation3]  }
   0xd   :  { %s95_s16 = scalar_lea.vmem %s27_s12, 256  ;;  %p100_p6 = scmp.lt.s32.totalorder %s27_s12, %s27_s12 }
   0xe   :  { %p96_p5 = scmp.ne.s32.totalorder %s27_s12, %s95_s16  ;;  %p101_p7 = scmp.lt.s32.totalorder %s95_s16, %s95_s16 }
  0x10   :  { %p102_p8 = por %p101_p7, %p100_p6 }
  0x12   :  { %p103_p9 = pnand %p102_p8, %p96_p5 }
  0x14   :  { %106 = shalt.err (!%p103_p9)
}
  0x15   :  { %29 = dma.hbm_to_vmem [thread:$0]  %s161_s1, 256, %s27_s12, [#allocation6]  }
  0x16   :  { %127 = dma.done.wait [#allocation3], 256  }
  0x17   :  { %128 = vsyncadd [#allocation3], 4294967040 }
  0x18   :  { %129 = dma.done.wait [#allocation6], 256  }
  0x19   :  { %130 = vsyncadd [#allocation6], 4294967040  ;;  %v36_v0 = vld [vmem:[#allocation2] sm:$0xff]  ;;  %v38_v1 = vld [vmem:[#allocation5] sm:$0xff]  ;;  %s135_s0 = smov [#allocation7]  }
  0x1a   :  { %v37_v2 = vld [vmem:[#allocation2 + $0x8] sm:$0xff]  ;;  %v40_v3 = vmul.f32 2.0, %v36_v0  ;;  %v42_v4 = vmul.f32 0.5, %v38_v1  ;;  %v39_v5 = vld [vmem:[#allocation5 + $0x8] sm:$0xff]  ;;  %s54_s19 = sshll.u32 %s135_s0, 4  ;;  %s55_s19 = int_to_ptr.vmem [resolvable:$true] %s54_s19 }
  0x1b   :  { %v41_v6 = vmul.f32 2.0, %v37_v2  ;;  %v43_v7 = vmul.f32 0.5, %v39_v5  ;;  %s107_s1 = scalar_lea.vmem %s55_s19, 256  ;;  %p112_p11 = scmp.lt.s32.totalorder %s55_s19, %s55_s19 }
  0x1c   :  { %v44_v8 = vadd.f32 %v42_v4, %v40_v3  ;;  %p108_p10 = scmp.ne.s32.totalorder %s55_s19, %s107_s1  ;;  %p113_p12 = scmp.lt.s32.totalorder %s107_s1, %s107_s1 }
  0x1d   :  { %v45_v9 = vadd.f32 %v43_v7, %v41_v6 }
  0x1e   :  { %46 = vst [vmem:[#allocation7] sm:$0xff] %v44_v8  ;;  %p114_p13 = por %p113_p12, %p112_p11 }
  0x1f   :  { %47 = vst [vmem:[#allocation7 + $0x8] sm:$0xff] %v45_v9 }
  0x20   :  { %p115_p0 = pnand %p114_p13, %p108_p10 }
  0x22   :  { %118 = shalt.err (!%p115_p0)
}
  0x23   :  { %57 = dma.vmem_to_hbm [thread:$0]  %s55_s19, 256, %s162_s2, [#allocation4]  }
  0x24   :  { %131 = dma.done.wait [#allocation4], 256  }
  0x25   :  { %132 = vsyncadd [#allocation4], 4294967040 }
  0x26   :  { %61 = vsyncpa [#allocation3], 1 }
  0x27   :  { %62 = vsyncpa [#allocation6], 1 }
  0x28   :  { %63 = vsyncpa [#allocation4], 1 }

</bundles_post_ra>
